<compile_context>
chip_gen: v5e
topology: v5e:2x2
jax: 0.10.0
libtpu: 0.0.40
codegen_flags: <defaults>
</compile_context>

<pallas_src>
import math

import jax
import jax.numpy as jnp
from jax import lax
from jax.experimental import pallas as pl
from jax.experimental.pallas import tpu as pltpu

LANE = 128
_RESIDENT_VMEM_BUDGET = 24 << 20   # resident-path working-set ceiling (bytes)


# --------------------------------------------------------------------------- #
# Layout helpers
# --------------------------------------------------------------------------- #
def _round_up(n, m):
    return ((n + m - 1) // m) * m


def _sublane(dtype):
    """Minimum packed sublane tile for a dtype (f32:8, bf16/f16:16, 8-bit:32)."""
    return {4: 8, 2: 16, 1: 32}.get(jnp.dtype(dtype).itemsize, 8)


def _gate_dims(H):
    """Return (Hp, GP): per-gate stride and padded total gate-axis width.

    H < 128 : no per-gate padding (Hp=H); pad only the combined 3H axis to a
              128-lane multiple. Gate slices are lane-unaligned (cheap static
              in-tile slices) but MXU/VPU/EUP work is not inflated 4-16x.
    H >= 128: per-gate padding to a 128 multiple -> lane-aligned slices, ~free.
    """
    Hp = H if H < LANE else _round_up(H, LANE)
    GP = _round_up(3 * Hp, LANE)
    return Hp, GP


def _pad_gate_axis(a, H, Hp, GP):
    """(..., 3H) [r|z|c] -> (..., GP), gate g starting at column g*Hp, zero fill."""
    lead = a.shape[:-1]
    if Hp != H:
        a = a.reshape(*lead, 3, H)
        a = jnp.pad(a, [(0, 0)] * len(lead) + [(0, 0), (0, Hp - H)])
        a = a.reshape(*lead, 3 * Hp)
    if GP != 3 * Hp:
        a = jnp.pad(a, [(0, 0)] * len(lead) + [(0, GP - 3 * Hp)])
    return a


def _pad_axis(a, axis, new_size):
    if a.shape[axis] == new_size:
        return a
    pads = [(0, 0)] * a.ndim
    pads[axis] = (0, new_size - a.shape[axis])
    return jnp.pad(a, pads)


def _pad_params(W, U, bias, H, Hp, GP):
    Wp = _pad_gate_axis(W, H, Hp, GP)                      # (I, GP)
    Up = _pad_axis(_pad_gate_axis(U, H, Hp, GP), 0, Hp)    # (Hp, GP)
    bp = _pad_gate_axis(bias.reshape(1, -1), H, Hp, GP)    # (1, GP)
    return Wp, Up, bp


def _squeeze_input(x):
    # torch's x.squeeze() drops ALL size-1 dims; guard so we never collapse
    # below 2-D (protects batch==1 / input_size==1).
    while x.ndim > 2:
        ax = next((a for a, s in enumerate(x.shape) if s == 1), None)
        if ax is None:
            raise ValueError(f"cannot squeeze {x.shape} to 2-D")
        x = jnp.squeeze(x, axis=ax)
    return x


def _vmem_limit(working_set_bytes):
    # Raise the scoped VMEM limit explicitly when needed; never above v7x's
    # 64 MiB physical VMEM per TensorCore (v5e/v6e have 128 MiB physical).
    return int(min(max(2 * working_set_bytes, 32 << 20), 64 << 20))


# --------------------------------------------------------------------------- #
# Kernels
# --------------------------------------------------------------------------- #
def gru_cell_kernel(x_ref, h_ref, w_ref, u_ref, b_ref, out_ref):
    """Single GRU step; all operands are full VMEM blocks.

    Gate axis layout: [r | z | c | pad], per-gate stride = out_ref.shape[-1].
    Matmuls accumulate in f32 on the MXU; gate math stays in f32; the final
    store casts back to the caller's dtype.
    """
    hp = out_ref.shape[-1]
    x = x_ref[...]                         # native dtype (bf16 fast path)
    h = h_ref[...]
    b = b_ref[...].astype(jnp.float32)

    ig = jnp.dot(x, w_ref[...], preferred_element_type=jnp.float32) + b
    hg = jnp.dot(h, u_ref[...], preferred_element_type=jnp.float32) + b

    r_t = jax.nn.sigmoid(ig[:, :hp] + hg[:, :hp])
    z_t = jax.nn.sigmoid(ig[:, hp:2 * hp] + hg[:, hp:2 * hp])
    c_t = jnp.tanh(ig[:, 2 * hp:3 * hp] + r_t * hg[:, 2 * hp:3 * hp])

    h32 = h.astype(jnp.float32)
    out_ref[...] = (c_t + z_t * (h32 - c_t)).astype(out_ref.dtype)


def gru_seq_resident_kernel(ig_ref, u_ref, b_ref, h0_ref, hs_ref):
    """Whole sequence in one kernel invocation (no grid).

    ig_ref : (T, Bp, GP) precomputed x_t @ W + b (compute dtype), VMEM-resident
    u_ref  : (Hp, GP)    recurrent weights, VMEM-resident
    b_ref  : (1, GP)     bias, VMEM-resident
    h0_ref : (Bp, Hp)    initial hidden state
    hs_ref : (T, Bp, Hp) per-step hidden states (output)
    """
    T, Bp, GP = ig_ref.shape
    Hp = hs_ref.shape[-1]

    # Loop-invariant work hoisted out of the recurrence (JAX does not CSE
    # broadcast_in_dim inside fori_loop bodies).
    b32 = jnp.broadcast_to(b_ref[...].astype(jnp.float32), (Bp, GP))
    h_init = h0_ref[...].astype(jnp.float32)

    def step(t, h):
        ig = ig_ref[t].astype(jnp.float32)          # already contains +bias
        hg = jnp.dot(h.astype(u_ref.dtype), u_ref[...],
                     preferred_element_type=jnp.float32) + b32
        r_t = jax.nn.sigmoid(ig[:, :Hp] + hg[:, :Hp])
        z_t = jax.nn.sigmoid(ig[:, Hp:2 * Hp] + hg[:, Hp:2 * Hp])
        c_t = jnp.tanh(ig[:, 2 * Hp:3 * Hp] + r_t * hg[:, 2 * Hp:3 * Hp])
        h_new = c_t + z_t * (h - c_t)
        hs_ref[t] = h_new.astype(hs_ref.dtype)
        return h_new

    # Short fixed trip-count: unroll for scheduler visibility.
    lax.fori_loop(0, T, step, h_init, unroll=True if T <= 16 else 4)


def gru_seq_streamed_kernel(ig_ref, u_ref, b_ref, h0_ref, hs_ref, h_scr):
    """Streamed fallback recurrence, grid=(T,). U / bias / h0 stay VMEM-resident
    (constant index_map, single-buffered); ig_t streams per step; the f32 hidden
    carry lives in scratch across grid steps."""
    t = pl.program_id(0)
    hp = h_scr.shape[-1]

    @pl.when(t == 0)
    def _():
        h_scr[...] = h0_ref[...].astype(jnp.float32)

    h = h_scr[...]
    ig = ig_ref[0].astype(jnp.float32)              # already contains +bias
    hg = jnp.dot(h.astype(u_ref.dtype), u_ref[...],
                 preferred_element_type=jnp.float32) + b_ref[...].astype(jnp.float32)

    r_t = jax.nn.sigmoid(ig[:, :hp] + hg[:, :hp])
    z_t = jax.nn.sigmoid(ig[:, hp:2 * hp] + hg[:, hp:2 * hp])
    c_t = jnp.tanh(ig[:, 2 * hp:3 * hp] + r_t * hg[:, 2 * hp:3 * hp])
    h_new = c_t + z_t * (h - c_t)

    h_scr[...] = h_new
    hs_ref[0] = h_new.astype(hs_ref.dtype)


# --------------------------------------------------------------------------- #
# Wrappers
# --------------------------------------------------------------------------- #
def gru_cell_forward(x, hidden_state, W, U, bias):
    """One GRU-cell step, matching CustomGRUCell.forward(x, hidden_state).

    NOTE: if this is driven from a host loop / lax.scan, prefer
    gru_sequence_forward — it amortizes the W/U DMA across the whole sequence.
    """
    x = _squeeze_input(x)
    B = x.shape[0]
    H = hidden_state.shape[1]
    Hp, GP = _gate_dims(H)
    Bp = _round_up(B, _sublane(x.dtype))

    Wp, Up, bp = _pad_params(W, U, bias, H, Hp, GP)
    xp = _pad_axis(x, 0, Bp)
    hp_ = _pad_axis(_pad_axis(hidden_state, 1, Hp), 0, Bp)

    cell_bytes = sum(int(a.size) * a.dtype.itemsize for a in (xp, hp_, Wp, Up, bp))
    vmem = pl.BlockSpec(memory_space=pltpu.MemorySpace.VMEM)
    out = pl.pallas_call(
        gru_cell_kernel,
        out_shape=jax.ShapeDtypeStruct((Bp, Hp), hidden_state.dtype),
        in_specs=[vmem] * 5,
        out_specs=vmem,
        compiler_params=pltpu.CompilerParams(
            vmem_limit_bytes=_vmem_limit(cell_bytes)),
    )(xp, hp_, Wp, Up, bp)
    return out[:B, :H]


def gru_sequence_forward(X, h0, W, U, bias, *, force_streamed=False):
    """Run the GRU cell over a sequence X: (T, B, I). Returns (T, B, H).

    The input projection x_t @ W + b is hoisted out of the recurrence into one
    big matmul. If the working set fits in VMEM, the whole recurrence runs in a
    single kernel invocation (in-kernel loop over T); otherwise ig streams per
    step under grid=(T,) with the weights VMEM-resident.
    """
    T, B, I = X.shape
    H = h0.shape[1]
    Hp, GP = _gate_dims(H)
    Bp = _round_up(B, _sublane(X.dtype))

    Wp, Up, bp = _pad_params(W, U, bias, H, Hp, GP)
    Xp = _pad_axis(X, 1, Bp)
    h0p = _pad_axis(_pad_axis(h0, 1, Hp), 0, Bp)

    # Hoisted input projection: one MXU-friendly (T*Bp, I)x(I, GP) matmul with
    # f32 accumulation, then stored in the compute dtype (bf16 stream when the
    # operands are bf16) to halve per-step bytes.
    ig = (jnp.dot(Xp.reshape(T * Bp, I), Wp, preferred_element_type=jnp.float32)
          + bp.astype(jnp.float32))
    ig = ig.astype(X.dtype).reshape(T, Bp, GP)

    itemsize = lambda a: jnp.dtype(a.dtype).itemsize
    resident_bytes = (int(ig.size) * itemsize(ig)            # ig slab
                      + T * Bp * Hp * itemsize(h0)           # hs output slab
                      + int(Up.size) * itemsize(Up)          # U
                      + int(bp.size) * itemsize(bp)          # bias
                      + Bp * Hp * (itemsize(h0) + 4))        # h0 + f32 carry

    if (not force_streamed) and resident_bytes <= _RESIDENT_VMEM_BUDGET:
        vmem = pl.BlockSpec(memory_space=pltpu.MemorySpace.VMEM)
        hs = pl.pallas_call(
            gru_seq_resident_kernel,
            out_shape=jax.ShapeDtypeStruct((T, Bp, Hp), h0.dtype),
            in_specs=[vmem] * 4,
            out_specs=vmem,
            compiler_params=pltpu.CompilerParams(
                vmem_limit_bytes=_vmem_limit(resident_bytes)),
        )(ig, Up, bp, h0p)
    else:
        step_bytes = (2 * Bp * GP * itemsize(ig)              # double-buffered ig_t
                      + int(Up.size) * itemsize(Up)
                      + int(bp.size) * itemsize(bp)
                      + Bp * Hp * (itemsize(h0) + 4)
                      + 2 * Bp * Hp * itemsize(h0))           # double-buffered hs_t
        hs = pl.pallas_call(
            gru_seq_streamed_kernel,
            out_shape=jax.ShapeDtypeStruct((T, Bp, Hp), h0.dtype),
            grid=(T,),
            in_specs=[
                pl.BlockSpec((1, Bp, GP), lambda t: (t, 0, 0)),     # streamed ig_t
                pl.BlockSpec((Hp, GP), lambda t: (0, 0),            # U resident
                             pipeline_mode=pl.Buffered(1)),
                pl.BlockSpec((1, GP), lambda t: (0, 0),             # bias resident
                             pipeline_mode=pl.Buffered(1)),
                pl.BlockSpec((Bp, Hp), lambda t: (0, 0),            # h0 resident
                             pipeline_mode=pl.Buffered(1)),
            ],
            out_specs=pl.BlockSpec((1, Bp, Hp), lambda t: (t, 0, 0)),
            scratch_shapes=[pltpu.VMEM((Bp, Hp), jnp.float32)],
            compiler_params=pltpu.CompilerParams(
                dimension_semantics=("arbitrary",),
                vmem_limit_bytes=_vmem_limit(step_bytes)),
        )(ig, Up, bp, h0p)
    return hs[:, :B, :H]


# --------------------------------------------------------------------------- #
# Pure-JAX references
# --------------------------------------------------------------------------- #
def gru_cell_reference(x, hidden_state, W, U, bias):
    x = _squeeze_input(x)
    h_t = hidden_state
    H = hidden_state.shape[1]
    ig = x @ W + bias
    hg = h_t @ U + bias
    r_t = jax.nn.sigmoid(ig[:, :H] + hg[:, :H])
    z_t = jax.nn.sigmoid(ig[:, H:2 * H] + hg[:, H:2 * H])
    c_t = jnp.tanh(ig[:, 2 * H:] + r_t * hg[:, 2 * H:])
    return c_t + z_t * (h_t - c_t)


def gru_sequence_reference(X, h0, W, U, bias):
    def step(h, x):
        h_new = gru_cell_reference(x, h, W, U, bias)
        return h_new, h_new
    _, hs = jax.lax.scan(step, h0, X)
    return hs


# --------------------------------------------------------------------------- #
# Demo / self-check
# --------------------------------------------------------------------------- #
if __name__ == "__main__":
    input_size, hidden_size, batch, seq_len = 16, 32, 8, 12

    key = jax.random.PRNGKey(0)
    kW, kU, kb, kx, kh, kX = jax.random.split(key, 6)

    stdv = 1.0 / math.sqrt(hidden_size)
    W = jax.random.uniform(kW, (input_size, 3 * hidden_size),
                           minval=-stdv, maxval=stdv, dtype=jnp.float32)
    U = jax.random.uniform(kU, (hidden_size, 3 * hidden_size),
                           minval=-stdv, maxval=stdv, dtype=jnp.float32)
    bias = jax.random.uniform(kb, (3 * hidden_size,),
                              minval=-stdv, maxval=stdv, dtype=jnp.float32)

    # x carries a size-1 dim that x.squeeze() removes, matching the module.
    x = jax.random.normal(kx, (batch, 1, input_size), dtype=jnp.float32)
    h0 = jax.random.normal(kh, (batch, hidden_size), dtype=jnp.float32)

    # 1) Single step, f32 (exact module semantics).
    out = gru_cell_forward(x, h0, W, U, bias)
    jax.block_until_ready(out)
    ref = gru_cell_reference(x, h0, W, U, bias)
    assert out.shape == (batch, hidden_size)
    assert jnp.allclose(out, ref, atol=3e-5, rtol=3e-5), "f32 single-step mismatch"

    # 2) Single step, bf16 operands (MXU fast path, f32 acc, B padded to 16).
    out_bf16 = gru_cell_forward(
        x.astype(jnp.bfloat16), h0.astype(jnp.bfloat16),
        W.astype(jnp.bfloat16), U.astype(jnp.bfloat16), bias.astype(jnp.bfloat16))
    jax.block_until_ready(out_bf16)
    assert jnp.allclose(out_bf16.astype(jnp.float32), ref, atol=7.5e-2, rtol=7.5e-2), \
        "bf16 single-step mismatch"

    # 3) Fused sequence, resident path: one launch, in-kernel loop over T.
    X = jax.random.normal(kX, (seq_len, batch, input_size), dtype=jnp.float32)
    hs = gru_sequence_forward(X, h0, W, U, bias)
    jax.block_until_ready(hs)
    hs_ref = gru_sequence_reference(X, h0, W, U, bias)
    assert hs.shape == (seq_len, batch, hidden_size)
    assert jnp.allclose(hs, hs_ref, atol=2e-4, rtol=2e-4), "resident sequence mismatch"

    # 4) Streamed fallback path: grid=(T,), single-buffered resident weights.
    hs_s = gru_sequence_forward(X, h0, W, U, bias, force_streamed=True)
    jax.block_until_ready(hs_s)
    assert jnp.allclose(hs_s, hs_ref, atol=2e-4, rtol=2e-4), "streamed sequence mismatch"

    # 5) bf16 sequence: bf16 ig stream, B padded to 16, f32 carry in-kernel.
    hs_bf16 = gru_sequence_forward(
        X.astype(jnp.bfloat16), h0.astype(jnp.bfloat16),
        W.astype(jnp.bfloat16), U.astype(jnp.bfloat16), bias.astype(jnp.bfloat16))
    jax.block_until_ready(hs_bf16)
    assert jnp.allclose(hs_bf16.astype(jnp.float32), hs_ref, atol=2e-1, rtol=2e-1), \
        "bf16 sequence mismatch"

    print("KERNEL_OK")
</pallas_src>

<mosaic_0001>
module attributes {stable_mosaic.version = 11 : i64} {
  func.func @gru_cell_kernel(%arg0: memref<8x16xf32, #tpu.memory_space<vmem>>, %arg1: memref<8x32xf32, #tpu.memory_space<vmem>>, %arg2: memref<16x128xf32, #tpu.memory_space<vmem>>, %arg3: memref<32x128xf32, #tpu.memory_space<vmem>>, %arg4: memref<1x128xf32, #tpu.memory_space<vmem>>, %arg5: memref<8x32xf32, #tpu.memory_space<vmem>>) attributes {dimension_semantics = [], scalar_prefetch = 0 : i64, scratch_operands = 0 : i64, tpu.core_type = #tpu.core_type<tc>} {
    %c0 = arith.constant 0 : index
    %c0_0 = arith.constant 0 : index
    %0 = vector.load %arg0[%c0, %c0_0] : memref<8x16xf32, #tpu.memory_space<vmem>>, vector<8x16xf32>
    %c0_1 = arith.constant 0 : index
    %c0_2 = arith.constant 0 : index
    %1 = vector.load %arg1[%c0_1, %c0_2] : memref<8x32xf32, #tpu.memory_space<vmem>>, vector<8x32xf32>
    %c0_3 = arith.constant 0 : index
    %c0_4 = arith.constant 0 : index
    %2 = vector.load %arg4[%c0_3, %c0_4] : memref<1x128xf32, #tpu.memory_space<vmem>>, vector<1x128xf32>
    %c0_5 = arith.constant 0 : index
    %c0_6 = arith.constant 0 : index
    %3 = vector.load %arg2[%c0_5, %c0_6] : memref<16x128xf32, #tpu.memory_space<vmem>>, vector<16x128xf32>
    %cst = arith.constant dense<0.000000e+00> : vector<8x128xf32>
    %4 = tpu.matmul %0, %3, %cst {dimension_numbers = #tpu.dot_dimension_numbers<[1], [0], [0], [1], [0, 0, 1, 1], [], []>} : vector<8x16xf32>, vector<16x128xf32>, vector<8x128xf32> -> vector<8x128xf32>
    %5 = vector.broadcast %2 : vector<1x128xf32> to vector<8x128xf32>
    %6 = arith.addf %4, %5 : vector<8x128xf32>
    %c0_7 = arith.constant 0 : index
    %c0_8 = arith.constant 0 : index
    %7 = vector.load %arg3[%c0_7, %c0_8] : memref<32x128xf32, #tpu.memory_space<vmem>>, vector<32x128xf32>
    %cst_9 = arith.constant dense<0.000000e+00> : vector<8x128xf32>
    %8 = tpu.matmul %1, %7, %cst_9 {dimension_numbers = #tpu.dot_dimension_numbers<[1], [0], [0], [1], [0, 0, 1, 1], [], []>} : vector<8x32xf32>, vector<32x128xf32>, vector<8x128xf32> -> vector<8x128xf32>
    %9 = vector.broadcast %2 : vector<1x128xf32> to vector<8x128xf32>
    %10 = arith.addf %8, %9 : vector<8x128xf32>
    %11 = vector.extract_strided_slice %6 {offsets = [0, 0], sizes = [8, 32], strides = [1, 1]} : vector<8x128xf32> to vector<8x32xf32>
    %12 = vector.extract_strided_slice %10 {offsets = [0, 0], sizes = [8, 32], strides = [1, 1]} : vector<8x128xf32> to vector<8x32xf32>
    %13 = arith.addf %11, %12 : vector<8x32xf32>
    %14 = arith.negf %13 : vector<8x32xf32>
    %15 = math.exp %14 : vector<8x32xf32>
    %cst_10 = arith.constant 1.000000e+00 : f32
    %16 = vector.broadcast %cst_10 : f32 to vector<8x32xf32>
    %17 = arith.addf %16, %15 : vector<8x32xf32>
    %18 = arith.divf %16, %17 : vector<8x32xf32>
    %19 = vector.extract_strided_slice %6 {offsets = [0, 32], sizes = [8, 32], strides = [1, 1]} : vector<8x128xf32> to vector<8x32xf32>
    %20 = vector.extract_strided_slice %10 {offsets = [0, 32], sizes = [8, 32], strides = [1, 1]} : vector<8x128xf32> to vector<8x32xf32>
    %21 = arith.addf %19, %20 : vector<8x32xf32>
    %22 = arith.negf %21 : vector<8x32xf32>
    %23 = math.exp %22 : vector<8x32xf32>
    %cst_11 = arith.constant 1.000000e+00 : f32
    %24 = vector.broadcast %cst_11 : f32 to vector<8x32xf32>
    %25 = arith.addf %24, %23 : vector<8x32xf32>
    %26 = arith.divf %24, %25 : vector<8x32xf32>
    %27 = vector.extract_strided_slice %6 {offsets = [0, 64], sizes = [8, 32], strides = [1, 1]} : vector<8x128xf32> to vector<8x32xf32>
    %28 = vector.extract_strided_slice %10 {offsets = [0, 64], sizes = [8, 32], strides = [1, 1]} : vector<8x128xf32> to vector<8x32xf32>
    %29 = arith.mulf %18, %28 : vector<8x32xf32>
    %30 = arith.addf %27, %29 : vector<8x32xf32>
    %31 = math.tanh %30 : vector<8x32xf32>
    %32 = arith.subf %1, %31 : vector<8x32xf32>
    %33 = arith.mulf %26, %32 : vector<8x32xf32>
    %34 = arith.addf %31, %33 : vector<8x32xf32>
    %c0_12 = arith.constant 0 : index
    %c0_13 = arith.constant 0 : index
    %35 = vector.load %arg5[%c0_12, %c0_13] : memref<8x32xf32, #tpu.memory_space<vmem>>, vector<8x32xf32>
    tpu.vector_store %arg5[%c0_12, %c0_13], %34 {strides = array<i32>} : memref<8x32xf32, #tpu.memory_space<vmem>>, vector<8x32xf32>,
    return
  }
}

</mosaic_0001>

<bundles_post_ra>
// kernel: tpu_custom_call.1
= control target key start
LH: loop header
LB: loop body
LE: loop exit
PB: predicated region body
PF: predicated region fallthrough
CT: control target
= control target key end

     0   :  { %10 = vsyncpa [#allocation3], 0  ;;  %s420_s0 = inlined_call_operand.hbm [shape: f32[8,16], index: 0, kind: input, shape index: {}]   ;;  %s421_s1 = inlined_call_operand.hbm [shape: f32[8,32], index: 1, kind: input, shape index: {}]   ;;  %s422_s2 = inlined_call_operand.hbm [shape: f32[16,128], index: 2, kind: input, shape index: {}]   ;;  %s423_s3 = inlined_call_operand.hbm [shape: f32[32,128], index: 3, kind: input, shape index: {}]   ;;  %s424_s4 = inlined_call_operand.vmem [shape: f32[1,128], index: 4, kind: input, shape index: {}]   ;;  %s425_s5 = inlined_call_operand.hbm [shape: f32[8,32], index: 5, kind: output, shape index: {}]  }
   0x1   :  { %11 = vsyncpa [#allocation6], 0 }
   0x2   :  { %12 = vsyncpa [#allocation9], 0  ;;  %s30_s20 = sshll.u32 %s421_s1, 4  ;;  %s31_s20 = int_to_ptr.hbm [resolvable:$true] %s30_s20 }
   0x3   :  { %13 = vsyncpa [#allocation4], 0  ;;  %s357_s21 = smov [#allocation5]   ;;  %s19_s25 = sshll.u32 %s420_s0, 4  ;;  %s20_s25 = int_to_ptr.hbm [resolvable:$true] %s19_s25 }
   0x4   :  { %s32_s22 = sshll.u32 %s357_s21, 4  ;;  %s358_s26 = smov [#allocation2]   ;;  %s33_s22 = int_to_ptr.vmem [resolvable:$true] %s32_s22 }
   0x5   :  { %35 = dma.hbm_to_vmem [thread:$0]  %s31_s20, 128, %s33_s22, [#allocation6]  }
   0x6   :  { %s21_s27 = sshll.u32 %s358_s26, 4  ;;  %s40_s30 = sshll.u32 %s422_s2, 4  ;;  %s22_s27 = int_to_ptr.vmem [resolvable:$true] %s21_s27  ;;  %s41_s30 = int_to_ptr.hbm [resolvable:$true] %s40_s30 }
   0x7   :  { %24 = dma.hbm_to_vmem [thread:$0]  %s20_s25, 128, %s22_s27, [#allocation3]  }
   0x8   :  { %s359_s1 = smov [#allocation7]   ;;  %s53_s9 = sshll.u32 %s423_s3, 4  ;;  %s54_s9 = int_to_ptr.hbm [resolvable:$true] %s53_s9 }
   0x9   :  { %s42_s6 = sshll.u32 %s359_s1, 4  ;;  %s360_s10 = smov 128   ;;  %s43_s6 = int_to_ptr.vmem [resolvable:$true] %s42_s6 }
   0xa   :  { %s361_s0 = smov 8   ;;  %s362_s11 = smov [#allocation8]  }
   0xb   :  { %48 = dma.hbm_to_vmem [thread:$0]  %s41_s30, 256, %s43_s6, [#allocation6], %s360_s10, %s360_s10, %s361_s0  }
   0xc   :  { %s55_s12 = sshll.u32 %s362_s11, 4  ;;  %s56_s12 = int_to_ptr.vmem [resolvable:$true] %s55_s12 }
   0xd   :  { %61 = dma.hbm_to_vmem [thread:$0]  %s54_s9, 512, %s56_s12, [#allocation9], %s360_s10, %s360_s10, %s361_s0  }
   0xe   :  { %349 = dma.done.wait [#allocation3], 128  }
   0xf   :  { %350 = vsyncadd [#allocation3], 4294967168 }
  0x10   :  { %351 = dma.done.wait [#allocation6], 384  }
  0x11   :  { %352 = vsyncadd [#allocation6], 4294966912 }
  0x12   :  { %353 = dma.done.wait [#allocation9], 512  }
  0x13   :  { %354 = vsyncadd [#allocation9], 4294966784  ;;  %v115_v0 = vld [vmem:[#allocation8 + $0x18] sm:$0xff]  ;;  %v114_v1 = vld [vmem:[#allocation8 + $0x10] sm:$0xff]  ;;  %vm88_vm0 = vcmask 130048   ;;  %vm116_vm1 = vcmask 261120  }
  0x14   :  { %v84_v2 = vld [vmem:[#allocation7 + $0x8] sm:$0xff]  ;;  %132 = vmatpush.msra.mxu1 %v115_v0  ;;  %v83_v3 = vld [vmem:[#allocation7] sm:$0xff]  ;;  %v113_v4 = vld [vmem:[#allocation8 + $0x8] sm:$0xff]  ;;  %s363_s13 = smov 64   ;;  %s365_s14 = smov [#allocation10]  }
  0x15   :  { %106 = vmatpush.msra.mxu0 %v84_v2  ;;  %v80_v5 = vld [vmem:[#allocation2] sm:$0xff]  ;;  %v81_v7 = vld [vmem:[#allocation5] sm:$0xff]  ;;  %s196_s15 = sshll.u32 %s365_s14, 4  ;;  %s198_s18 = sshll.u32 %s425_s5, 4  ;;  %s197_s15 = int_to_ptr.vmem [resolvable:$true] %s196_s15  ;;  %s199_s18 = int_to_ptr.hbm [resolvable:$true] %s198_s18 }
  0x16   :  { %133 = vmatpush.msra.mxu1 %v114_v1  ;;  %v112_v6 = vld [vmem:[#allocation8] sm:$0xff] }
  0x17   :  { %107 = vmatpush.msra.mxu0 %v83_v3  ;;  %v222_v8 = vld [vmem:[%s424_s4] ss:$0 sm:$0xff]  ;;  %s364_s4 = smov 32  }
  0x18   :  { %210 = vmatmul.msk.f32.vlgmr.msra.gmra.mxu0 %vm88_vm0, %v80_v5  ;;  %134 = vmatpush.msra.mxu1 %v113_v4 }
  0x1a   :  { %135 = vmatpush.msra.mxu1 %v112_v6 }
  0x1b   :  { %211 = vmatmul.msk.f32.vlgmr.msra.gmra.mxu1 %vm116_vm1, %v81_v7 }
  0x95   :  { %v109_v11 = vpop.f32.mrf.mxu0 }
  0x96   :  { %v110_v12 = vadd.f32 %v222_v8, %v109_v11 }
  0x98   :  { %v137_v9 = vpop.f32.mrf.mxu1 }
  0x99   :  { %v138_v10 = vadd.f32 %v222_v8, %v137_v9 }
  0x9b   :  { %161 = vrot.lane.b32.xlu0 %v138_v10, %s363_s13  ;;  %v140_v13 = vadd.f32 %v138_v10, %v110_v12 }
  0x9d   :  { %v212_v14 = vmul.f32 -1.442695, %v140_v13 }
  0x9f   :  { %223 = vpow2.f32 %v212_v14 }
  0xa5   :  { %v224_v15 = vpop.eup %223 }
  0xa6   :  { %v144_v16 = vadd.f32 1.0, %v224_v15 }
  0xa8   :  { %225 = vrcp.f32 %v144_v16  ;;  %v156_v22 = vand.u32 2147483648, %v144_v16  ;;  %vm150_vm3 = vweird.f32 %v144_v16  ;;  %v154_v23 = vand.u32 2147483647, %v144_v16 }
  0xaa   :  { %v157_v25 = vor.u32 1.1754944e-38, %v156_v22  ;;  %vm155_vm5 = vcmp.eq.f32.partialorder %v154_v23, 8.507059e+37 }
  0xae   :  { %v226_v17 = vpop.eup %225 }
  0xaf   :  { %v146_v18 = vmul.f32 %v226_v17, %v144_v16  ;;  %vm151_vm2 = vweird.f32 %v226_v17 }
  0xb0   :  { %vm152_vm4 = vmor %vm150_vm3, %vm151_vm2 }
  0xb1   :  { %v147_v19 = vsub.f32 1.0, %v146_v18 }
  0xb3   :  { %v148_v20 = vmul.f32 %v226_v17, %v147_v19 }
  0xb5   :  { %v149_v21 = vadd.f32 %v226_v17, %v148_v20 }
  0xb7   :  { %v153_v24 = vsel %vm152_vm4, %v226_v17, %v149_v21 }
  0xb8   :  { %v158_v27 = vsel %vm155_vm5, %v157_v25, %v153_v24 }
 0x10d   :  { %v162_v26 = vpop.permute.xlu0 %161 }
 0x10e   :  { %v164_v28 = vmul.f32 %v162_v26, %v158_v27 }
 0x110   :  { %166 = vrot.lane.b32.xlu0 %v164_v28, %s363_s13 }
 0x182   :  { %v167_v29 = vpop.permute.xlu0 %166 }
 0x183   :  { %v169_v30 = vadd.f32 %v167_v29, %v110_v12 }
 0x185   :  { %227 = vtanh.f32 %v169_v30 }
 0x18b   :  { %v228_v31 = vpop.eup %227 }
 0x18c   :  { %172 = vrot.lane.b32.xlu1 %v228_v31, %s363_s13 }
 0x1fe   :  { %v173_v32 = vpop.permute.xlu1 %172 }
 0x1ff   :  { %v175_v33 = vsub.f32 %v81_v7, %v173_v32 }
 0x201   :  { %177 = vrot.lane.b32.xlu1 %v175_v33, %s364_s4 }
 0x273   :  { %v178_v34 = vpop.permute.xlu1 %177 }
 0x274   :  { %v180_v35 = vmul.f32 %v178_v34, %v158_v27 }
 0x276   :  { %182 = vrot.lane.b32.xlu2 %v180_v35, %s364_s4 }
 0x2d0   :  { %v183_v36 = vpop.permute.xlu2 %182 }
 0x2d1   :  { %v185_v37 = vadd.f32 %v228_v31, %v183_v36 }
 0x2d3   :  { %187 = vrot.lane.b32.xlu2 %v185_v37, %s363_s13 }
 0x32d   :  { %v188_v38 = vpop.permute.xlu2 %187 }
 0x32e   :  { %190 = vst.msk [vmem:[#allocation10] sm:$0xff] %vm116_vm1, %v188_v38 }
 0x32f   :  { %201 = dma.vmem_to_hbm [thread:$0]  %s197_s15, 128, %s199_s18, [#allocation4]  }
 0x330   :  { %355 = dma.done.wait [#allocation4], 128  }
 0x331   :  { %356 = vsyncadd [#allocation4], 4294967168 }
 0x332   :  { %206 = vsyncpa [#allocation3], 1 }
 0x333   :  { %207 = vsyncpa [#allocation6], 1 }
 0x334   :  { %208 = vsyncpa [#allocation9], 1 }
 0x335   :  { %209 = vsyncpa [#allocation4], 1 }

</bundles_post_ra>
